<compile_context>
chip_gen: v6e
topology: v6e:2x2x1
jax: 0.10.0
libtpu: 0.0.40
codegen_flags: <defaults>
</compile_context>

<pallas_src>
import jax
import jax.numpy as jnp
from jax.experimental import pallas as pl
from jax.experimental.pallas import tpu as pltpu


def mean_pool_kernel(h_ref, m_ref, o_ref, acc_ref, msum_ref):
    # h_ref: (TB, TS, H) native dtype; m_ref: (TB, TS)
    # o_ref: (TB, H) f32; acc_ref: (TB, H) f32 scratch; msum_ref: (TB, 1) f32 scratch
    k = pl.program_id(1)

    @pl.when(k == 0)
    def _init():
        acc_ref[...] = jnp.zeros_like(acc_ref)
        msum_ref[...] = jnp.zeros_like(msum_ref)

    h = h_ref[...]                                  # (TB, TS, H), native dtype
    m = m_ref[...]                                  # (TB, TS), int mask

    # Masked sum over the sequence tile on the MXU:
    # (TB, 1, TS) @ (TB, TS, H) -> (TB, 1, H), accumulated in float32.
    m_h = m.astype(h.dtype)[:, None, :]
    partial = jnp.einsum("bqs,bsh->bqh", m_h, h,
                         preferred_element_type=jnp.float32)
    acc_ref[...] += partial[:, 0, :]
    msum_ref[...] += jnp.sum(m.astype(jnp.float32), axis=1, keepdims=True)

    @pl.when(k == pl.num_programs(1) - 1)
    def _finalize():
        denom = jnp.maximum(msum_ref[...], 1e-9)    # torch.clamp(min=1e-9)
        o_ref[...] = (acc_ref[...] / denom).astype(o_ref.dtype)


def _choose_tiles(B, S, H, itemsize, budget_bytes=6 * 1024 * 1024):
    # Batch tile: 8 rows when possible (full sublanes, unmasked output stores),
    # otherwise the whole (small) batch so the block equals the full dim.
    TB = 8 if B >= 8 else B
    # Sequence tile: largest multiple of 128 whose (TB, TS, H) block stays
    # within the per-block budget; x2 double-buffering then stays well inside
    # the scoped-VMEM limits on v5e / v6e / v7x.
    ts = (budget_bytes // max(1, TB * H * itemsize)) // 128 * 128
    ts = max(128, min(512, ts))
    TS = S if S <= ts else ts                        # full-dim block is always legal
    return TB, TS


def mean_pooling(last_hidden_state, attention_mask):
    B, S, H = last_hidden_state.shape
    h_itemsize = jnp.dtype(last_hidden_state.dtype).itemsize
    m_itemsize = jnp.dtype(attention_mask.dtype).itemsize

    TB, TS = _choose_tiles(B, S, H, h_itemsize)
    Bp = -(-B // TB) * TB
    Sp = -(-S // TS) * TS

    h = last_hidden_state
    m = attention_mask
    if Bp != B or Sp != S:
        # Zero-pad: padded positions have mask == 0, so no garbage reaches the
        # accumulator (tail-safety for S % TS != 0 and B % TB != 0).
        h = jnp.pad(h, ((0, Bp - B), (0, Sp - S), (0, 0)))
        m = jnp.pad(m, ((0, Bp - B), (0, Sp - S)))

    grid = (Bp // TB, Sp // TS)

    # Explicit scoped-VMEM limit sized from the actual blocks (with headroom).
    h_block = TB * TS * H * h_itemsize
    m_block = TB * TS * m_itemsize
    o_block = TB * H * 4
    scratch_bytes = TB * H * 4 + TB * 128 * 4
    vmem_limit = int(max(32 * 1024 * 1024,
                         2 * (h_block + m_block) + o_block + scratch_bytes + (2 << 20)))

    out = pl.pallas_call(
        mean_pool_kernel,
        out_shape=jax.ShapeDtypeStruct((Bp, H), jnp.float32),
        grid_spec=pltpu.PrefetchScalarGridSpec(
            num_scalar_prefetch=0,
            grid=grid,
            in_specs=[
                pl.BlockSpec((TB, TS, H), lambda b, k: (b, k, 0)),
                pl.BlockSpec((TB, TS), lambda b, k: (b, k)),
            ],
            out_specs=pl.BlockSpec((TB, H), lambda b, k: (b, 0)),
            scratch_shapes=[
                pltpu.VMEM((TB, H), jnp.float32),   # sum_embeddings accumulator
                pltpu.VMEM((TB, 1), jnp.float32),   # sum_mask accumulator
            ],
        ),
        compiler_params=pltpu.CompilerParams(
            dimension_semantics=("parallel", "arbitrary"),
            vmem_limit_bytes=vmem_limit,
        ),
        cost_estimate=pl.CostEstimate(
            flops=2 * Bp * Sp * H,
            transcendentals=0,
            bytes_accessed=Bp * Sp * H * h_itemsize + Bp * Sp * m_itemsize + Bp * H * 4,
        ),
    )(h, m)
    return out[:B]


def mean_pooling_ref(last_hidden_state, attention_mask):
    m = attention_mask.astype(jnp.float32)[..., None]
    h = last_hidden_state.astype(jnp.float32)
    sum_emb = jnp.sum(h * m, axis=1)
    sum_mask = jnp.clip(jnp.sum(m, axis=1), 1e-9, None)
    return sum_emb / sum_mask


if __name__ == "__main__":
    key = jax.random.PRNGKey(0)
    k1, k2 = jax.random.split(key)
    B, S, H = 2, 8, 32
    last_hidden_state = jax.random.normal(k1, (B, S, H), dtype=jnp.float32)
    # Binary attention mask with a few padded positions.
    attention_mask = (jax.random.uniform(k2, (B, S)) > 0.3).astype(jnp.int32)

    out = mean_pooling(last_hidden_state, attention_mask)
    out = jax.block_until_ready(out)

    ref = mean_pooling_ref(last_hidden_state, attention_mask)
    assert out.shape == (B, H)
    assert jnp.allclose(out, ref, atol=1e-5, rtol=1e-5), "mismatch vs reference"

    print("KERNEL_OK")
</pallas_src>

<mosaic_0001>
module attributes {stable_mosaic.version = 11 : i64} {
  func.func @mean_pool_kernel(%arg0: i32, %arg1: i32, %arg2: memref<2x8x32xf32, #tpu.memory_space<vmem>>, %arg3: memref<2x8xi32, #tpu.memory_space<vmem>>, %arg4: memref<2x32xf32, #tpu.memory_space<vmem>>, %arg5: memref<2x32xf32, #tpu.memory_space<vmem>>, %arg6: memref<2x1xf32, #tpu.memory_space<vmem>>) attributes {dimension_semantics = [#tpu.dimension_semantics<parallel>, #tpu.dimension_semantics<arbitrary>], iteration_bounds = array<i64: 1, 1>, scalar_prefetch = 0 : i64, scratch_operands = 2 : i64, tpu.core_type = #tpu.core_type<tc>, window_params = [{transform_indices = @transform_0, window_bounds = array<i64: 2, 8, 32>}, {transform_indices = @transform_1, window_bounds = array<i64: 2, 8>}, {transform_indices = @transform_2, window_bounds = array<i64: 2, 32>}]} {
    %c0_i32 = arith.constant 0 : i32
    %0 = arith.cmpi eq, %arg1, %c0_i32 : i32
    %1 = arith.extui %0 : i1 to i32
    %c0_i32_0 = arith.constant 0 : i32
    %2 = arith.cmpi ne, %1, %c0_i32_0 : i32
    scf.if %2 {
      %cst_16 = arith.constant 0.000000e+00 : f32
      %21 = vector.broadcast %cst_16 : f32 to vector<2x32xf32>
      %c0_17 = arith.constant 0 : index
      %c0_18 = arith.constant 0 : index
      %22 = vector.load %arg5[%c0_17, %c0_18] : memref<2x32xf32, #tpu.memory_space<vmem>>, vector<2x32xf32>
      tpu.vector_store %arg5[%c0_17, %c0_18], %21 {strides = array<i32>} : memref<2x32xf32, #tpu.memory_space<vmem>>, vector<2x32xf32>,
      %cst_19 = arith.constant 0.000000e+00 : f32
      %23 = vector.broadcast %cst_19 : f32 to vector<2x1xf32>
      %c0_20 = arith.constant 0 : index
      %c0_21 = arith.constant 0 : index
      %24 = vector.load %arg6[%c0_20, %c0_21] : memref<2x1xf32, #tpu.memory_space<vmem>>, vector<2x1xf32>
      tpu.vector_store %arg6[%c0_20, %c0_21], %23 {strides = array<i32>} : memref<2x1xf32, #tpu.memory_space<vmem>>, vector<2x1xf32>,
    } else {
    }
    %c0 = arith.constant 0 : index
    %c0_1 = arith.constant 0 : index
    %c0_2 = arith.constant 0 : index
    %3 = vector.load %arg2[%c0, %c0_1, %c0_2] : memref<2x8x32xf32, #tpu.memory_space<vmem>>, vector<2x8x32xf32>
    %c0_3 = arith.constant 0 : index
    %c0_4 = arith.constant 0 : index
    %4 = vector.load %arg3[%c0_3, %c0_4] : memref<2x8xi32, #tpu.memory_space<vmem>>, vector<2x8xi32>
    %5 = arith.sitofp %4 : vector<2x8xi32> to vector<2x8xf32>
    %6 = vector.shape_cast %5 : vector<2x8xf32> to vector<2x1x8xf32>
    "tpu.trace_start"() <{level = 10 : i32, message = "bqs,bsh->bqh"}> : () -> ()
    %cst = arith.constant dense<0.000000e+00> : vector<2x1x32xf32>
    %7 = tpu.matmul %6, %3, %cst {dimension_numbers = #tpu.dot_dimension_numbers<[2], [1], [1], [2], [0, 0, 0, 1, 1, 2], [0], [0]>} : vector<2x1x8xf32>, vector<2x8x32xf32>, vector<2x1x32xf32> -> vector<2x1x32xf32>
    "tpu.trace_stop"() : () -> ()
    %c0_5 = arith.constant 0 : index
    %c0_6 = arith.constant 0 : index
    %8 = vector.load %arg5[%c0_5, %c0_6] : memref<2x32xf32, #tpu.memory_space<vmem>>, vector<2x32xf32>
    %9 = vector.shape_cast %7 : vector<2x1x32xf32> to vector<2x32xf32>
    %10 = arith.addf %8, %9 : vector<2x32xf32>
    %c0_7 = arith.constant 0 : index
    %c0_8 = arith.constant 0 : index
    %11 = vector.load %arg5[%c0_7, %c0_8] : memref<2x32xf32, #tpu.memory_space<vmem>>, vector<2x32xf32>
    tpu.vector_store %arg5[%c0_7, %c0_8], %10 {strides = array<i32>} : memref<2x32xf32, #tpu.memory_space<vmem>>, vector<2x32xf32>,
    %c0_9 = arith.constant 0 : index
    %c0_10 = arith.constant 0 : index
    %12 = vector.load %arg6[%c0_9, %c0_10] : memref<2x1xf32, #tpu.memory_space<vmem>>, vector<2x1xf32>
    %13 = arith.sitofp %4 : vector<2x8xi32> to vector<2x8xf32>
    %cst_11 = arith.constant dense<0.000000e+00> : vector<2xf32>
    %14 = vector.multi_reduction <add>, %13, %cst_11 [1] : vector<2x8xf32> to vector<2xf32>
    %15 = vector.shape_cast %14 : vector<2xf32> to vector<2x1xf32>
    %16 = arith.addf %12, %15 : vector<2x1xf32>
    %c0_12 = arith.constant 0 : index
    %c0_13 = arith.constant 0 : index
    %17 = vector.load %arg6[%c0_12, %c0_13] : memref<2x1xf32, #tpu.memory_space<vmem>>, vector<2x1xf32>
    tpu.vector_store %arg6[%c0_12, %c0_13], %16 {strides = array<i32>} : memref<2x1xf32, #tpu.memory_space<vmem>>, vector<2x1xf32>,
    %c0_i32_14 = arith.constant 0 : i32
    %18 = arith.cmpi eq, %arg1, %c0_i32_14 : i32
    %19 = arith.extui %18 : i1 to i32
    %c0_i32_15 = arith.constant 0 : i32
    %20 = arith.cmpi ne, %19, %c0_i32_15 : i32
    scf.if %20 {
      %c0_16 = arith.constant 0 : index
      %c0_17 = arith.constant 0 : index
      %21 = vector.load %arg6[%c0_16, %c0_17] : memref<2x1xf32, #tpu.memory_space<vmem>>, vector<2x1xf32>
      %cst_18 = arith.constant 9.99999971E-10 : f32
      %22 = vector.broadcast %cst_18 : f32 to vector<2x1xf32>
      %23 = arith.maximumf %21, %22 : vector<2x1xf32>
      %c0_19 = arith.constant 0 : index
      %c0_20 = arith.constant 0 : index
      %24 = vector.load %arg5[%c0_19, %c0_20] : memref<2x32xf32, #tpu.memory_space<vmem>>, vector<2x32xf32>
      %25 = vector.broadcast %23 : vector<2x1xf32> to vector<2x32xf32>
      %26 = arith.divf %24, %25 : vector<2x32xf32>
      %c0_21 = arith.constant 0 : index
      %c0_22 = arith.constant 0 : index
      %27 = vector.load %arg4[%c0_21, %c0_22] : memref<2x32xf32, #tpu.memory_space<vmem>>, vector<2x32xf32>
      tpu.vector_store %arg4[%c0_21, %c0_22], %26 {strides = array<i32>} : memref<2x32xf32, #tpu.memory_space<vmem>>, vector<2x32xf32>,
    } else {
    }
    return
  }
  func.func @transform_0(%arg0: i32, %arg1: i32) -> (i32, i32, i32) {
    %c0_i32 = arith.constant 0 : i32
    %c0_i32_0 = arith.constant 0 : i32
    return %arg0, %arg1, %c0_i32 : i32, i32, i32
  }
  func.func @transform_1(%arg0: i32, %arg1: i32) -> (i32, i32) {
    %c0_i32 = arith.constant 0 : i32
    return %arg0, %arg1 : i32, i32
  }
  func.func @transform_2(%arg0: i32, %arg1: i32) -> (i32, i32) {
    %c0_i32 = arith.constant 0 : i32
    %c0_i32_0 = arith.constant 0 : i32
    return %arg0, %c0_i32 : i32, i32
  }
}

</mosaic_0001>

<bundles_post_ra>
// kernel: tpu_custom_call.1
= control target key start
LH: loop header
LB: loop body
LE: loop exit
PB: predicated region body
PF: predicated region fallthrough
CT: control target
= control target key end

     0   :  { %7 = vsyncpa [#allocation5], 0  ;;  %s398_s0 = inlined_call_operand.hbm [shape: f32[2,8,32], index: 0, kind: input, shape index: {}]   ;;  %s399_s1 = inlined_call_operand.hbm [shape: s32[2,8], index: 1, kind: input, shape index: {}]   ;;  %s400_s2 = inlined_call_operand.hbm [shape: f32[2,32], index: 2, kind: output, shape index: {}]  }
   0x1   :  { %8 = vsyncpa [#allocation8], 0 }
   0x2   :  { %9 = vsyncpa [#allocation6], 0  ;;  %s360_s9 = smov [#allocation4]  }
   0x3   :  { %s15_s10 = sshll.u32 %s360_s9, 4  ;;  %s16_s10 = int_to_ptr.vmem [resolvable:$true] %s15_s10 }
   0x4   :  { %s302_s11 = scalar_lea.vmem %s16_s10, 256  ;;  %p307_p1 = scmp.lt.s32.totalorder %s16_s10, %s16_s10 }
   0x5   :  { %p303_p0 = scmp.ne.s32.totalorder %s16_s10, %s302_s11  ;;  %p308_p2 = scmp.lt.s32.totalorder %s302_s11, %s302_s11 }
   0x7   :  { %p309_p3 = por %p308_p2, %p307_p1 }
   0x9   :  { %p310_p4 = pnand %p309_p3, %p303_p0 }
   0xb   :  { %313 = shalt.err (!%p310_p4)
}
   0xc   :  { %s361_s12 = smov 128   ;;  %s362_s13 = smov 8  }
   0xd   :  { %21 = dma.hbm_to_vmem [thread:$0]  %s398_s0, 256, %s16_s10, [#allocation5], %s361_s12, %s361_s12, %s362_s13  }
   0xe   :  { %s363_s16 = smov [#allocation7]  }
   0xf   :  { %s28_s17 = sshll.u32 %s363_s16, 4  ;;  %s29_s17 = int_to_ptr.vmem [resolvable:$true] %s28_s17 }
  0x10   :  { %s322_s18 = scalar_lea.vmem %s29_s17, 32  ;;  %p327_p6 = scmp.lt.s32.totalorder %s29_s17, %s29_s17 }
  0x11   :  { %p323_p5 = scmp.ne.s32.totalorder %s29_s17, %s322_s18  ;;  %p328_p7 = scmp.lt.s32.totalorder %s322_s18, %s322_s18 }
  0x13   :  { %p329_p8 = por %p328_p7, %p327_p6 }
  0x15   :  { %p330_p9 = pnand %p329_p8, %p323_p5 }
  0x17   :  { %333 = shalt.err (!%p330_p9)
}
  0x18   :  { %31 = dma.hbm_to_vmem [thread:$0]  %s399_s1, 32, %s29_s17, [#allocation8]  }
  0x19   :  { %354 = dma.done.wait [#allocation5], 256  }
  0x1a   :  { %355 = vsyncadd [#allocation5], 4294967040 }
  0x1b   :  { %356 = dma.done.wait [#allocation8], 32  }
  0x1c   :  { %357 = vsyncadd [#allocation8], 4294967264  ;;  %v54_v0 = vlaneseq  ;;  %v364_v1 = vmov 1966171168   ;;  %v365_v3 = vmov 0.0   ;;  %vm44_vm0 = vcmask 1024  }
  0x1d   :  { %v52_v2 = vunpack.c.l.s4 %v364_v1  ;;  %277 = vmatprep.subr.mxu1 %v365_v3  ;;  %272 = vmatprep.subr.mxu0 %v365_v3  ;;  %vm366_vm1 = vmmov 0   ;;  %45 = vst.msk [vmem:[#allocation3] sm:$0x3] %vm44_vm0, %v365_v3  ;;  %v48_v7 = vld [vmem:[#allocation7] sm:$0x3]  ;;  %vm229_vm2 = vcmask 58368  }
  0x1e   :  { %v55_v4 = vshrl.u32 %v54_v0, 7  ;;  %279 = vmatprep.mubr.msk.f32.mxu1 %vm366_vm1, %v365_v3  ;;  %274 = vmatprep.mubr.msk.f32.mxu0 %vm366_vm1, %v365_v3  ;;  %v47_v8 = vld [vmem:[#allocation4 + $0x8] sm:$0xff]  ;;  %v46_v9 = vld [vmem:[#allocation4] sm:$0xff]  ;;  %v49_v10 = vcvt.s32.f32 %v48_v7  ;;  %vm73_vm3 = vcmask 64512   ;;  %v367_v16 = vmov 0   ;;  %s368_s0 = smov [#allocation9]  }
  0x1f   :  { %v53_v5 = vunpack.c.0.s8 %v52_v2  ;;  %278 = vmatpush3.msra.mxu1 %v47_v8  ;;  %273 = vmatpush3.msra.mxu0 %v46_v9  ;;  %vm42_vm4 = vcmask 254976   ;;  %vm222_vm5 = vcmask 1041409   ;;  %s256_s1 = sshll.u32 %s368_s0, 4  ;;  %s257_s1 = int_to_ptr.vmem [resolvable:$true] %s256_s1 }
  0x20   :  { %v230_v11 = vsel %vm229_vm2, %v49_v10, 0.0  ;;  %291 = vset.pattern.permute.xlu0 %v367_v16  ;;  %43 = vst.msk [vmem:[#allocation2] sm:$0x3] %vm42_vm4, %v365_v3  ;;  %s334_s21 = scalar_lea.vmem %s257_s1, 32  ;;  %p339_p11 = scmp.lt.s32.totalorder %s257_s1, %s257_s1 }
  0x21   :  { %v56_v6 = vsub.s32 %v53_v5, %v55_v4  ;;  %231 = vadd.xlane.f32.xlu0 %v230_v11  ;;  %p335_p10 = scmp.ne.s32.totalorder %s257_s1, %s334_s21  ;;  %p340_p12 = scmp.lt.s32.totalorder %s334_s21, %s334_s21 }
  0x23   :  { %v57_v12 = vrot.slane %v49_v10, %v56_v6  ;;  %p341_p13 = por %p340_p12, %p339_p11 }
  0x24   :  { %v228_v17 = vld [vmem:[#allocation3] sm:$0x3] }
  0x25   :  { %v58_v13 = vcombine.high %v57_v12, %v57_v12  ;;  %v65_v14 = vrot.slane %v57_v12, %v56_v6  ;;  %p342_p0 = pnand %p341_p13, %p335_p10 }
  0x27   :  { %v72_v15 = vrot.slane %v58_v13, %v56_v6  ;;  %275 = vmatmul.mubr.msk.f32.vlgmr.msra.gmra.mxu0 %vm73_vm3, %v65_v14  ;;  %v218_v26 = vld [vmem:[#allocation2] sm:$0x3] }
  0x29   :  { %280 = vmatmul.mubr.msk.f32.vlgmr.msra.gmra.mxu1 %vm73_vm3, %v72_v15 }
  0xaa   :  { %v232_v18 = vpop.xlane.xlu0 %231 }
  0xab   :  { %v233_v19 = vadd.f32 %v232_v18, %v228_v17 }
  0xad   :  { %235 = vst.msk [vmem:[#allocation3] sm:$0x3] %vm44_vm0, %v233_v19 }
  0xb4   :  { %v239_v20 = vld [vmem:[#allocation3] sm:$0x3] }
  0xb5   :  { %v240_v21 = vmax.f32 %v239_v20, 1e-09 }
  0xb7   :  { %244 = vperm.xlu0 %291, %v240_v21  }
  0xe7   :  { %v142_v22 = vpop.f32.mrf.mxu0 }
  0xe9   :  { %v214_v23 = vpop.f32.mrf.mxu1  ;;  %v276_v24 = vpop.f32.mrf.mxu0 }
  0xea   :  { %v221_v25 = vrot.slane %v214_v23, 7 }
  0xeb   :  { %v281_v27 = vpop.f32.mrf.mxu1 }
  0xec   :  { %v223_v28 = vsel %vm222_vm5, %v221_v25, %v142_v22 }
  0xed   :  { %v225_v29 = vadd.f32 %v223_v28, %v218_v26 }
  0xef   :  { %227 = vst.msk [vmem:[#allocation2] sm:$0x3] %vm42_vm4, %v225_v29 }
  0xf6   :  { %v241_v31 = vld [vmem:[#allocation2] sm:$0x3] }
 0x132   :  { %v245_v30 = vpop.permute.xlu0 %244 }
 0x133   :  { %292 = vrcp.f32 %v245_v30 }
 0x140   :  { %v293_v32 = vpop.eup %292 }
 0x141   :  { %v248_v33 = vmul.f32 %v293_v32, %v241_v31 }
 0x143   :  { %249 = vst.msk [vmem:[#allocation9] sm:$0x3] %vm42_vm4, %v248_v33 }
 0x144   :  { %345 = shalt.err (!%p342_p0)
}
 0x145   :  { %259 = dma.vmem_to_hbm [thread:$0]  %s257_s1, 32, %s400_s2, [#allocation6]  }
 0x146   :  { %358 = dma.done.wait [#allocation6], 32  }
 0x147   :  { %359 = vsyncadd [#allocation6], 4294967264 }
 0x148   :  { %263 = vsyncpa [#allocation5], 1 }
 0x149   :  { %264 = vsyncpa [#allocation8], 1 }
 0x14a   :  { %265 = vsyncpa [#allocation6], 1 }

</bundles_post_ra>
